<compile_context>
chip_gen: v5e
topology: v5e:2x2
jax: 0.10.0
libtpu: 0.0.40
codegen_flags: <defaults>
</compile_context>

<pallas_src>
import functools

import jax
import jax.numpy as jnp
from jax.experimental import pallas as pl
from jax.experimental.pallas import tpu as pltpu


# ----------------------------------------------------------------------------
# helpers
# ----------------------------------------------------------------------------
def _rup(x, m):
    return ((x + m - 1) // m) * m


class _Keys:
    """Deterministic key stream."""

    def __init__(self, key):
        self._k = key

    def __call__(self):
        self._k, sub = jax.random.split(self._k)
        return sub


# ----------------------------------------------------------------------------
# Pallas matmul kernel (1x1 convs, im2col fallbacks, fc)
#   single full-K / full-N block per call -> weights DMA'd exactly once,
#   no accumulator scratch, bf16 out (f32 for fc), fused bias / BN stats.
# ----------------------------------------------------------------------------
def _mm_kernel(*refs, with_bias, with_stats):
    if with_bias:
        a_ref, b_ref, bias_ref = refs[:3]
        refs = refs[3:]
    else:
        a_ref, b_ref = refs[:2]
        bias_ref = None
        refs = refs[2:]
    if with_stats:
        o_ref, s_ref = refs
    else:
        (o_ref,) = refs
        s_ref = None

    acc = jnp.dot(a_ref[...], b_ref[...], preferred_element_type=jnp.float32)
    if with_bias:
        acc = acc + bias_ref[...]
    o_ref[...] = acc.astype(o_ref.dtype)
    if with_stats:
        # padded rows of A are zeros -> contribute nothing to the statistics.
        cs = jnp.sum(acc, axis=0, keepdims=True)
        cq = jnp.sum(acc * acc, axis=0, keepdims=True)
        s_ref[...] = jnp.concatenate([cs, cq], axis=0)


def _pick_tm(M, K):
    """Row-tile selection for the single-(K,N)-block matmul.

    Prefers tiles dividing M exactly (no HBM pad copy of A), keeps the A slab
    around <= 3 MiB bf16 per block, and keeps >= 2 row blocks when M is large
    enough so both v7x TensorCores get work.
    """
    cap = max(16, min(512, ((3 << 20) // max(2 * K, 1)) // 16 * 16))
    if M >= 128:
        cap = min(cap, max(16, (M // 2) // 16 * 16))
    best = 0
    for t in range(16, cap + 1, 16):
        if M % t == 0:
            best = t
    if best >= 64 or best == M:
        return best, M
    tm = min(cap, _rup(M, 16))
    return tm, _rup(M, tm)


@functools.lru_cache(maxsize=None)
def _mm_call(Mp, K, N, tm, out_dtype, with_bias, with_stats):
    kern = functools.partial(_mm_kernel, with_bias=with_bias,
                             with_stats=with_stats)
    in_specs = [
        pl.BlockSpec((tm, K), lambda i: (i, 0)),       # streamed row tiles
        pl.BlockSpec((K, N), lambda i: (0, 0)),        # resident weight (1 DMA)
    ]
    if with_bias:
        in_specs.append(pl.BlockSpec((1, N), lambda i: (0, 0)))

    gi = Mp // tm
    out_shape = jax.ShapeDtypeStruct((Mp, N), out_dtype)
    out_specs = pl.BlockSpec((tm, N), lambda i: (i, 0))
    if with_stats:
        out_shape = (out_shape, jax.ShapeDtypeStruct((gi, 2, N), jnp.float32))
        out_specs = [out_specs,
                     pl.BlockSpec((None, 2, N), lambda i: (i, 0, 0))]

    # rough double-buffered VMEM footprint; only set an explicit limit when the
    # resident weight would overflow the 32 MiB scoped default (v7x: 64 MiB
    # physical, v5e/v6e: 128 MiB).
    est = 2 * (tm * K * 2 + K * N * 2 +
               tm * N * jnp.dtype(out_dtype).itemsize) + tm * N * 4
    cp = dict(dimension_semantics=("parallel",))
    if est > 30 * (1 << 20):
        cp["vmem_limit_bytes"] = int(min(100 * (1 << 20), est * 1.4))

    f = pl.pallas_call(
        kern,
        out_shape=out_shape,
        grid_spec=pltpu.PrefetchScalarGridSpec(
            num_scalar_prefetch=0,
            grid=(gi,),
            in_specs=in_specs,
            out_specs=out_specs,
        ),
        compiler_params=pltpu.CompilerParams(**cp),
    )
    return jax.jit(f)


def pallas_matmul(a, b, bias=None, want_stats=False, out_dtype=jnp.bfloat16):
    """a: (M, K), b: (K, N) -> (M, N)[, (col_sum, col_sumsq) over rows]."""
    M, K = a.shape
    K2, N = b.shape
    assert K == K2
    if a.dtype != jnp.bfloat16:
        a = a.astype(jnp.bfloat16)
    if b.dtype != jnp.bfloat16:
        b = b.astype(jnp.bfloat16)

    tm, Mp = _pick_tm(M, K)
    if Mp != M:
        a = jnp.pad(a, ((0, Mp - M), (0, 0)))

    args = [a, b]
    if bias is not None:
        args.append(bias.reshape(1, N).astype(jnp.float32))

    f = _mm_call(Mp, K, N, tm, out_dtype, bias is not None, bool(want_stats))
    res = f(*args)
    if want_stats:
        out, stats = res
        s = jnp.sum(stats, axis=0)                     # (2, N)
        stats = (s[0], s[1])
    else:
        out = res
    if Mp != M:
        out = out[:M]
    return (out, stats) if want_stats else out


# ----------------------------------------------------------------------------
# Streamed 3x3 stride-1 conv: per-image padded slab in VMEM, 9 shifted-window
# matmuls accumulated in f32 ("im2col in VMEM"), fused BN-stats epilogue.
# ----------------------------------------------------------------------------
def _dconv_kernel(*refs, KH, KW, Wp, OH, OW, with_stats):
    if with_stats:
        x_ref, w_ref, o_ref, s_ref = refs
    else:
        x_ref, w_ref, o_ref = refs
        s_ref = None
    L = OH * Wp                       # contiguous rows covering all outputs
    acc = None
    for kh in range(KH):
        for kw in range(KW):
            a = x_ref[pl.ds(kh * Wp + kw, L), :]       # shifted flat window
            d = jnp.dot(a, w_ref[kh * KW + kw],
                        preferred_element_type=jnp.float32)
            acc = d if acc is None else acc + d
    y = acc.reshape(OH, Wp, -1)[:, :OW, :]             # drop the halo columns
    o_ref[...] = y.astype(o_ref.dtype)
    if with_stats:
        cs = jnp.sum(y, axis=(0, 1), keepdims=True).reshape(1, -1)
        cq = jnp.sum(y * y, axis=(0, 1), keepdims=True).reshape(1, -1)
        s_ref[...] = jnp.concatenate([cs, cq], axis=0)


@functools.lru_cache(maxsize=None)
def _dconv_call(N, HWp, Wp, Cin, Cout, KH, KW, OH, OW, with_stats):
    kern = functools.partial(_dconv_kernel, KH=KH, KW=KW, Wp=Wp, OH=OH, OW=OW,
                             with_stats=with_stats)
    in_specs = [
        pl.BlockSpec((None, HWp, Cin), lambda n: (n, 0, 0)),      # image slab
        pl.BlockSpec((KH * KW, Cin, Cout), lambda n: (0, 0, 0)),  # resident W
    ]
    out_shape = jax.ShapeDtypeStruct((N, OH, OW, Cout), jnp.bfloat16)
    out_specs = pl.BlockSpec((None, OH, OW, Cout), lambda n: (n, 0, 0, 0))
    if with_stats:
        out_shape = (out_shape,
                     jax.ShapeDtypeStruct((N, 2, Cout), jnp.float32))
        out_specs = [out_specs,
                     pl.BlockSpec((None, 2, Cout), lambda n: (n, 0, 0))]
    f = pl.pallas_call(
        kern,
        out_shape=out_shape,
        grid_spec=pltpu.PrefetchScalarGridSpec(
            num_scalar_prefetch=0,
            grid=(N,),
            in_specs=in_specs,
            out_specs=out_specs,
        ),
        compiler_params=pltpu.CompilerParams(
            dimension_semantics=("parallel",)),
    )
    return jax.jit(f)


def _direct_conv_s1(xb, w4d, padding, want_stats):
    """Stride-1 conv without an HBM im2col tensor (any odd/even kernel)."""
    N, H, W, C = xb.shape
    KH, KW, Cin, Cout = w4d.shape
    OH = H + 2 * padding - KH + 1
    OW = W + 2 * padding - KW + 1
    Wp = W + 2 * padding                      # == OW + KW - 1 for stride 1
    Hp = H + 2 * padding + 1                  # +1 zero row: all windows in-bounds
    # single pad (also provides the conv halo), then a free row-major flatten.
    xp = jnp.pad(xb, ((0, 0), (padding, padding + 1), (padding, padding),
                      (0, 0)))
    xf = xp.reshape(N, Hp * Wp, C)
    wt = w4d.reshape(KH * KW, Cin, Cout)
    if wt.dtype != jnp.bfloat16:
        wt = wt.astype(jnp.bfloat16)

    # per-image VMEM feasibility (slab + resident weight + f32 tap accumulator)
    est = (2 * Hp * Wp * C * 2 + 2 * KH * KW * Cin * Cout * 2 +
           2 * OH * OW * Cout * 2 + OH * Wp * Cout * 4 + OH * Wp * C * 2)
    if est > 24 * (1 << 20):
        raise ValueError("direct-conv slab too large for VMEM")

    f = _dconv_call(N, Hp * Wp, Wp, Cin, Cout, KH, KW, OH, OW,
                    bool(want_stats))
    res = f(xf, wt)
    if want_stats:
        out, st = res
        s = jnp.sum(st, axis=0)
        return out, (s[0], s[1])
    return res


# ----------------------------------------------------------------------------
# conv front-end (1x1 path, streamed 3x3 path, im2col fallback)
# ----------------------------------------------------------------------------
_DIRECT_CONV_DISABLED = set()


def _im2col(xb, KH, KW, stride, padding, OH, OW):
    N, _, _, C = xb.shape
    if padding:
        xb = jnp.pad(xb, ((0, 0), (padding, padding),
                          (padding, padding), (0, 0)))
    patches = []
    for kh in range(KH):
        for kw in range(KW):
            patches.append(xb[:, kh:kh + stride * OH:stride,
                              kw:kw + stride * OW:stride, :])
    return jnp.stack(patches, axis=3).reshape(N * OH * OW, KH * KW * C)


def conv2d(x, w4d, stride, padding, want_stats=False):
    """x: NHWC (bf16), w4d: (KH, KW, Cin, Cout) bf16."""
    N, H, W, C = x.shape
    KH, KW, Cin, Cout = w4d.shape
    OH = (H + 2 * padding - KH) // stride + 1
    OW = (W + 2 * padding - KW) // stride + 1
    xb = x if x.dtype == jnp.bfloat16 else x.astype(jnp.bfloat16)

    if KH == 1 and KW == 1 and padding == 0:
        if stride > 1:
            xb = xb[:, ::stride, ::stride, :]
        a = xb.reshape(N * OH * OW, C)
    elif stride == 1:
        key = (KH, KW, Cin, Cout, H, W, padding)
        if key not in _DIRECT_CONV_DISABLED:
            try:
                return _direct_conv_s1(xb, w4d, padding, want_stats)
            except Exception:
                # TODO(synk): if the streamed path fails to lower on some
                # backend/shape, silently fall back to HBM im2col.
                _DIRECT_CONV_DISABLED.add(key)
        a = _im2col(xb, KH, KW, stride, padding, OH, OW)
    else:
        # TODO(synk): the 4 stride-2 convs (7x7 head + stage-transition 3x3s)
        # still use HBM im2col; streaming them needs strided in-kernel windows
        # or an even/odd phase split of the input.
        a = _im2col(xb, KH, KW, stride, padding, OH, OW)

    b = w4d.reshape(KH * KW * Cin, Cout)
    res = pallas_matmul(a, b, want_stats=want_stats)
    if want_stats:
        out, stats = res
        return out.reshape(N, OH, OW, Cout), stats
    return res.reshape(N, OH, OW, Cout)


# ----------------------------------------------------------------------------
# fused BatchNorm-apply (+ residual) (+ ReLU): bf16 in/out, f32 math,
# lane-dense row folding for 64-channel activations, ~2 MiB row tiles.
# ----------------------------------------------------------------------------
def _bn_kernel(*refs, relu, with_res):
    if with_res:
        x_ref, r_ref, s_ref, b_ref, o_ref = refs
    else:
        x_ref, s_ref, b_ref, o_ref = refs
        r_ref = None
    y = x_ref[...].astype(jnp.float32) * s_ref[...] + b_ref[...]
    if with_res:
        y = y + r_ref[...].astype(jnp.float32)
    if relu:
        y = jnp.maximum(y, 0.0)
    o_ref[...] = y.astype(o_ref.dtype)


def _bn_row_tile(R, C):
    """~2 MiB bf16 row tiles; prefers divisors of R (no HBM pad copy)."""
    cap = max(8, ((2 << 20) // (2 * C)) // 8 * 8)
    if R <= cap:
        if R >= 2048 and R % 16 == 0:
            return R // 2, R               # keep 2 blocks for megacore
        Rp = _rup(R, 8)
        return Rp, Rp
    best = 0
    for t in range(8, cap + 1, 8):
        if R % t == 0:
            best = t
    if best >= 64:
        return best, R
    return cap, _rup(R, cap)


@functools.lru_cache(maxsize=None)
def _bn_call(Rp, C, tr, relu, with_res):
    kern = functools.partial(_bn_kernel, relu=relu, with_res=with_res)
    row = pl.BlockSpec((tr, C), lambda i: (i, 0))
    vec = pl.BlockSpec((1, C), lambda i: (0, 0))
    in_specs = [row, row, vec, vec] if with_res else [row, vec, vec]
    f = pl.pallas_call(
        kern,
        out_shape=jax.ShapeDtypeStruct((Rp, C), jnp.bfloat16),
        grid=(Rp // tr,),
        in_specs=in_specs,
        out_specs=row,
        compiler_params=pltpu.CompilerParams(
            dimension_semantics=("parallel",)),
    )
    return jax.jit(f)


def bn_apply(y2d, stats, gamma, beta, relu, residual=None, eps=1e-5):
    """Training-mode BatchNorm (batch stats, biased var), fused apply.

    `stats` = per-channel (sum, sum-of-squares) produced in the conv epilogue,
    so the activation is never re-read just for statistics.
    """
    R, C = y2d.shape
    ssum, ssq = stats
    mean = ssum / R
    # TODO(synk): E[x^2]-E[x]^2 can cancel for |mean| >> std; switch to a
    # two-pass / Welford update if activation means drift far from zero.
    var = jnp.maximum(ssq / R - mean * mean, 0.0)
    scale = (gamma * jax.lax.rsqrt(var + eps)).astype(jnp.float32)
    shift = (beta - mean * scale).astype(jnp.float32)

    # lane-dense view for narrow channel counts (C=64): fold pairs of rows into
    # one 128-wide row so stores are full-lane vst instead of masked vst.msk.
    fold = 1
    if C < 128 and 128 % C == 0 and R % (128 // C) == 0:
        fold = 128 // C
    Rw, Cw = R // fold, C * fold
    x = y2d.reshape(Rw, Cw)
    res = residual.reshape(Rw, Cw) if residual is not None else None
    if fold > 1:
        scale = jnp.tile(scale, fold)
        shift = jnp.tile(shift, fold)

    tr, Rp = _bn_row_tile(Rw, Cw)
    if Rp != Rw:
        x = jnp.pad(x, ((0, Rp - Rw), (0, 0)))
        if res is not None:
            res = jnp.pad(res, ((0, Rp - Rw), (0, 0)))
    args = [x]
    if res is not None:
        args.append(res)
    args += [scale.reshape(1, Cw), shift.reshape(1, Cw)]
    out = _bn_call(Rp, Cw, tr, bool(relu), res is not None)(*args)
    if Rp != Rw:
        out = out[:Rw]
    return out.reshape(R, C)


def bn_act(x_nhwc, stats, bn_p, relu):
    N, H, W, C = x_nhwc.shape
    y = bn_apply(x_nhwc.reshape(N * H * W, C), stats,
                 bn_p["gamma"], bn_p["beta"], relu)
    return y.reshape(N, H, W, C)


def bn_add_act(x_nhwc, res_nhwc, stats, bn_p, relu):
    N, H, W, C = x_nhwc.shape
    y = bn_apply(x_nhwc.reshape(N * H * W, C), stats,
                 bn_p["gamma"], bn_p["beta"], relu,
                 residual=res_nhwc.reshape(N * H * W, C))
    return y.reshape(N, H, W, C)


# ----------------------------------------------------------------------------
# pooling (bf16 JAX glue)
# ----------------------------------------------------------------------------
def maxpool3x3_s2(x):
    """3x3 / stride 2 / pad 1 max pool (padding via -inf), NHWC bf16."""
    # TODO(synk): could be fused into the head's BN+ReLU Pallas pass to save
    # one HBM round trip over the largest activation; kept as glue for now.
    N, H, W, C = x.shape
    k, s, p = 3, 2, 1
    xp = jnp.pad(x, ((0, 0), (p, p), (p, p), (0, 0)),
                 constant_values=-jnp.inf)
    OH = (H + 2 * p - k) // s + 1
    OW = (W + 2 * p - k) // s + 1
    out = None
    for kh in range(k):
        for kw in range(k):
            v = xp[:, kh:kh + s * OH:s, kw:kw + s * OW:s, :]
            out = v if out is None else jnp.maximum(out, v)
    return out


# ----------------------------------------------------------------------------
# ResNet-50 blocks (head, 16 bottlenecks, tail) -- matches torchvision resnet50
# ----------------------------------------------------------------------------
def head_fn(x, p):
    h, st = conv2d(x, p["conv1"], stride=2, padding=3, want_stats=True)
    h = bn_act(h, st, p["bn1"], relu=True)
    return maxpool3x3_s2(h)


def bottleneck_fn(x, bp):
    identity = x
    h, st = conv2d(x, bp["w1"], stride=1, padding=0, want_stats=True)
    h = bn_act(h, st, bp["bn1"], relu=True)
    h, st = conv2d(h, bp["w2"], stride=bp["stride"], padding=1, want_stats=True)
    h = bn_act(h, st, bp["bn2"], relu=True)
    h, st3 = conv2d(h, bp["w3"], stride=1, padding=0, want_stats=True)
    if "w_ds" in bp:
        identity, st_ds = conv2d(x, bp["w_ds"], stride=bp["stride"], padding=0,
                                 want_stats=True)
        identity = bn_act(identity, st_ds, bp["bn_ds"], relu=False)
    return bn_add_act(h, identity, st3, bp["bn3"], relu=True)


def tail_fn(x, p):
    x = jnp.mean(x.astype(jnp.float32), axis=(1, 2))   # AdaptiveAvgPool + Flatten
    return pallas_matmul(x, p["fc_w"], bias=p["fc_b"],
                         out_dtype=jnp.float32)         # bias fused in epilogue


def build_blocks(params):
    blocks = [functools.partial(head_fn, p=params)]
    for stage in params["layers"]:
        for bp in stage:
            blocks.append(functools.partial(bottleneck_fn, bp=bp))
    blocks.append(functools.partial(tail_fn, p=params))
    return blocks


def make_splits(blocks, num_splits):
    """Mirrors Resnet_BLL._make_splits exactly."""
    if num_splits is None or num_splits == 0:
        return [list(blocks)]
    new_blocks = []
    splits = num_splits + 1
    start_idx = 0
    num_blocks = len(blocks)
    inc = round(num_blocks / splits)
    while splits > 1:
        new_blocks.append(list(blocks[start_idx:start_idx + inc]))
        start_idx += inc
        splits -= 1
    new_blocks.append(list(blocks[start_idx:num_blocks]))
    return new_blocks


# ----------------------------------------------------------------------------
# parameter initialization (deterministic, synthetic; weights pre-cast to bf16)
# ----------------------------------------------------------------------------
def init_params(key, num_classes):
    kg = _Keys(key)

    def conv_w(cout, cin, k):
        std = (2.0 / (cin * k * k)) ** 0.5
        w = jax.random.normal(kg(), (k, k, cin, cout), jnp.float32) * std
        return w.astype(jnp.bfloat16)                  # pre-cast once

    def bn(c):
        return {"gamma": jnp.ones((c,), jnp.float32),
                "beta": jnp.zeros((c,), jnp.float32)}

    params = {"conv1": conv_w(64, 3, 7), "bn1": bn(64), "layers": []}
    inplanes = 64
    for planes, nblocks, stride in [(64, 3, 1), (128, 4, 2),
                                    (256, 6, 2), (512, 3, 2)]:
        stage = []
        for bi in range(nblocks):
            s = stride if bi == 0 else 1
            bp = {"w1": conv_w(planes, inplanes, 1), "bn1": bn(planes),
                  "w2": conv_w(planes, planes, 3), "bn2": bn(planes),
                  "w3": conv_w(planes * 4, planes, 1), "bn3": bn(planes * 4),
                  "stride": s}
            if bi == 0:  # downsample branch (1x1 conv + bn)
                bp["w_ds"] = conv_w(planes * 4, inplanes, 1)
                bp["bn_ds"] = bn(planes * 4)
            stage.append(bp)
            inplanes = planes * 4
        params["layers"].append(stage)

    fc_in = 512 * 4
    params["fc_w"] = (jax.random.normal(kg(), (fc_in, num_classes), jnp.float32)
                      * (1.0 / fc_in ** 0.5)).astype(jnp.bfloat16)
    params["fc_b"] = jnp.zeros((num_classes,), jnp.float32)
    return params


# ----------------------------------------------------------------------------
# Resnet_BLL forward
# ----------------------------------------------------------------------------
def resnet_bll_forward(x_nchw, params, num_splits=3, no_detach=False,
                       denoise=0.0):
    """Returns (activations[-1], activations[:-1], denoise_activations)."""
    x = jnp.transpose(x_nchw, (0, 2, 3, 1)).astype(jnp.bfloat16)  # NCHW->NHWC
    groups = make_splits(build_blocks(params), num_splits)

    activations = []
    denoise_activations = []
    for group in groups:
        for blk in group:
            x = blk(x)
        # record activation in PyTorch's NCHW / f32 convention
        if x.ndim == 4:
            act = jnp.transpose(x, (0, 3, 1, 2)).astype(jnp.float32)
        else:
            act = x
        activations.append(act)
        if denoise > 0:
            # TODO(synk): denoise>0 path (block(x_in + denoise*randn)) unused
            # in the reference config (denoise=0.0); not exercised here.
            pass
        if not no_detach:
            x = jax.lax.stop_gradient(x)               # mirrors .detach()
    return activations[-1], activations[:-1], denoise_activations


# ----------------------------------------------------------------------------
if __name__ == "__main__":
    num_classes = 10
    kparam, kx = jax.random.split(jax.random.PRNGKey(0))
    params = init_params(kparam, num_classes)

    # small NCHW input (batch=2, 3 channels, 32x32 spatial)
    x = jax.random.normal(kx, (2, 3, 32, 32), jnp.float32)

    logits, intermediates, denoise_acts = resnet_bll_forward(
        x, params, num_splits=3, no_detach=False, denoise=0.0)

    jax.block_until_ready(logits)
    for a in intermediates:
        jax.block_until_ready(a)

    assert logits.shape == (2, num_classes)
    assert len(intermediates) == 3            # num_splits splits before final
    assert len(denoise_acts) == 0
    print("KERNEL_OK")
</pallas_src>

<mosaic_0001>
module attributes {stable_mosaic.version = 11 : i64} {
  func.func @_mm_kernel(%arg0: i32, %arg1: memref<256x147xbf16, #tpu.memory_space<vmem>>, %arg2: memref<147x64xbf16, #tpu.memory_space<vmem>>, %arg3: memref<256x64xbf16, #tpu.memory_space<vmem>>, %arg4: memref<1x2x64xf32, #tpu.memory_space<vmem>>) attributes {dimension_semantics = [#tpu.dimension_semantics<parallel>], iteration_bounds = array<i64: 2>, scalar_prefetch = 0 : i64, scratch_operands = 0 : i64, tpu.core_type = #tpu.core_type<tc>, window_params = [{transform_indices = @transform_0, window_bounds = array<i64: 256, 147>}, {pipeline_mode = #tpu.pipeline_mode<synchronous>, transform_indices = @transform_1, window_bounds = array<i64: 147, 64>}, {transform_indices = @transform_2, window_bounds = array<i64: 256, 64>}, {transform_indices = @transform_3, window_bounds = array<i64: 1, 2, 64>}]} {
    %c0 = arith.constant 0 : index
    %c0_0 = arith.constant 0 : index
    %0 = vector.load %arg1[%c0, %c0_0] : memref<256x147xbf16, #tpu.memory_space<vmem>>, vector<256x147xbf16>
    %c0_1 = arith.constant 0 : index
    %c0_2 = arith.constant 0 : index
    %1 = vector.load %arg2[%c0_1, %c0_2] : memref<147x64xbf16, #tpu.memory_space<vmem>>, vector<147x64xbf16>
    %cst = arith.constant dense<0.000000e+00> : vector<256x64xf32>
    %2 = tpu.matmul %0, %1, %cst {dimension_numbers = #tpu.dot_dimension_numbers<[1], [0], [0], [1], [0, 0, 1, 1], [], []>} : vector<256x147xbf16>, vector<147x64xbf16>, vector<256x64xf32> -> vector<256x64xf32>
    %3 = arith.truncf %2 : vector<256x64xf32> to vector<256x64xbf16>
    %c0_3 = arith.constant 0 : index
    %c0_4 = arith.constant 0 : index
    %4 = vector.load %arg3[%c0_3, %c0_4] : memref<256x64xbf16, #tpu.memory_space<vmem>>, vector<256x64xbf16>
    tpu.vector_store %arg3[%c0_3, %c0_4], %3 {strides = array<i32>} : memref<256x64xbf16, #tpu.memory_space<vmem>>, vector<256x64xbf16>,
    %cst_5 = arith.constant dense<0.000000e+00> : vector<64xf32>
    %5 = vector.multi_reduction <add>, %2, %cst_5 [0] : vector<256x64xf32> to vector<64xf32>
    %6 = vector.shape_cast %5 : vector<64xf32> to vector<1x64xf32>
    %7 = arith.mulf %2, %2 : vector<256x64xf32>
    %cst_6 = arith.constant dense<0.000000e+00> : vector<64xf32>
    %8 = vector.multi_reduction <add>, %7, %cst_6 [0] : vector<256x64xf32> to vector<64xf32>
    %9 = vector.shape_cast %8 : vector<64xf32> to vector<1x64xf32>
    %10 = tpu.concatenate %6, %9 in 0 : vector<1x64xf32>, vector<1x64xf32> -> vector<2x64xf32>
    %c0_7 = arith.constant 0 : index
    %c0_8 = arith.constant 0 : index
    %c0_9 = arith.constant 0 : index
    %11 = vector.load %arg4[%c0_7, %c0_8, %c0_9] : memref<1x2x64xf32, #tpu.memory_space<vmem>>, vector<1x2x64xf32>
    %12 = vector.shape_cast %11 : vector<1x2x64xf32> to vector<2x64xf32>
    %13 = vector.shape_cast %10 : vector<2x64xf32> to vector<1x2x64xf32>
    tpu.vector_store %arg4[%c0_7, %c0_8, %c0_9], %13 {strides = array<i32>} : memref<1x2x64xf32, #tpu.memory_space<vmem>>, vector<1x2x64xf32>,
    return
  }
  func.func @transform_0(%arg0: i32) -> (i32, i32) {
    %c0_i32 = arith.constant 0 : i32
    %c0_i32_0 = arith.constant 0 : i32
    return %arg0, %c0_i32 : i32, i32
  }
  func.func @transform_1(%arg0: i32) -> (i32, i32) {
    %c0_i32 = arith.constant 0 : i32
    %c0_i32_0 = arith.constant 0 : i32
    %c0_i32_1 = arith.constant 0 : i32
    return %c0_i32, %c0_i32_0 : i32, i32
  }
  func.func @transform_2(%arg0: i32) -> (i32, i32) {
    %c0_i32 = arith.constant 0 : i32
    %c0_i32_0 = arith.constant 0 : i32
    return %arg0, %c0_i32 : i32, i32
  }
  func.func @transform_3(%arg0: i32) -> (i32, i32, i32) {
    %c0_i32 = arith.constant 0 : i32
    %c0_i32_0 = arith.constant 0 : i32
    %c0_i32_1 = arith.constant 0 : i32
    return %arg0, %c0_i32, %c0_i32_0 : i32, i32, i32
  }
}

</mosaic_0001>

<bundles_post_ra>
// kernel: tpu_custom_call.1
= control target key start
LH: loop header
LB: loop body
LE: loop exit
PB: predicated region body
PF: predicated region fallthrough
CT: control target
= control target key end

     0   :  { %9 = vsyncpa [#allocation3], 0  ;;  %s1870_s0 = inlined_call_operand.vmem [shape: bf16[512,147], index: 0, kind: input, shape index: {}]   ;;  %s1871_s1 = inlined_call_operand.vmem [shape: bf16[147,64], index: 1, kind: input, shape index: {}]   ;;  %s1872_s2 = inlined_call_operand.vmem [shape: bf16[512,64], index: 2, kind: output, shape index: {0}]   ;;  %s1873_s3 = inlined_call_operand.hbm [shape: f32[2,2,64], index: 3, kind: output, shape index: {1}]  }
   0x1   :  { %11 = vsyncpa [#allocation3 + $0x1], 0  ;;  %s1394_s12 = smov 0   ;;  %s1396_s13 = smov 0  }
   0x2   :  { %s1398_s14 = smov 0   ;;  %s1400_s15 = smov 0  }
   0x3 LB: > { %s1415_s16 = sadd.s32 4294967295, %s1371_s15   ;;  %s1023_s17 = sadd.s32 4294967294, %s1371_s15   ;;  %s1371_s15 = sphi %s1400_s15, %s1879_s15   ;;  %s1367_s14 = sphi %s1398_s14, %s1878_s14   ;;  %s1363_s13 = sphi %s1396_s13, %s1877_s13   ;;  %s1359_s12 = sphi %s1394_s12, %s1876_s12  }
   0x4   : > { %s1419_s18 = sadd.s32 1, %s1371_s15   ;;  %s97_s19 = sadd.s32 1, %s1367_s14 }
   0x5   : > { %s94_s20 = ssub.s32 %s1371_s15, %s1419_s18  ;;  %p107_p0 = scmp.ne.s32.totalorder %s1367_s14, %s1363_s13 }
   0x6   : > { %p95_p1 = scmp.eq.s32.totalorder %s94_s20, 0  ;;  %p108_p2 = scmp.eq.s32.totalorder %s1415_s16, 1 }
   0x7   : > { %p113_p3 = scmp.ne.s32.totalorder %s1363_s13, %s1359_s12  ;;  %p114_p4 = scmp.eq.s32.totalorder %s1023_s17, 1 }
   0x8   : > { %s1430_s21 = scalar_select %p95_p1, %s1367_s14, %s97_s19  }
   0x9   : > { %p1432_p5 = por %p108_p2, %p107_p0  ;;  %p1436_p6 = por %p114_p4, %p113_p3 }
   0xa   : > { %p1026_p7 = scmp.ge.s32.totalorder %s1371_s15, 1  ;;  %p145_p8 = scmp.lt.s32.totalorder %s1371_s15, 3 }
   0xc   : > { %p146_p9 = pnand %p1026_p7, %p145_p8 }
   0xd   : > { %s1028_s28 = sshll.u32 (!%p146_p9), %s1415_s16, 5  ;;  %s1214_s10 = sshll.u32 (!%p146_p9), %s1415_s16, 1 }
   0xe   : > { %149 = sbr.rel (%p146_p9) target bundleno = 352 (0x160), region = 28  ;;  %p176_p10 = scmp.lt.s32.totalorder (!%p146_p9), %s1028_s28, 63 }
   0xf   : > { %s934_s19 = scalar_lea.hbm (!%p146_p9), %s1873_s3, %s1214_s10  ;;  %s1329_s4 = scalar_lea.hbm (!%p146_p9), %s1873_s3, 4 }
  0x10   : > { %s938_s25 = sshll.u32 (!%p146_p9), %s934_s19, 4  ;;  %s939_s25 = int_to_ptr.hbm [resolvable:$true] %s938_s25 }
  0x11   : > { %s1323_s26 = sshra.s32 (!%p146_p9), %s939_s25, 4  ;;  %s1324_s26 = int_to_ptr.hbm [resolvable:$true] %s1323_s26 }
  0x12   : > { %s1325_s27 = scalar_lea.hbm (!%p146_p9), %s1324_s26, 2  ;;  %p1330_p0 = scmp.lt.s32.totalorder (!%p146_p9), %s1324_s26, %s1873_s3 }
  0x13   : > { %v1257_v0 = vld [vmem:[%s1871_s1 + $0x38] sm:$0xff]  ;;  %v239_v1 = vld [vmem:[%s1871_s1 + $0x48] sm:$0x3]  ;;  %vm490_vm0 = vcmask 1040384   ;;  %vm491_vm1 = vcmask 1041408   ;;  %v1256_v3 = vld [vmem:[%s1871_s1 + $0x30] sm:$0xff]  ;;  %p1326_p11 = scmp.ne.s32.totalorder %s1324_s26, %s1325_s27  ;;  %p1331_p1 = scmp.lt.s32.totalorder %s1329_s4, %s1325_s27 }
  0x14   : > { %v421_v2 = vunpack.c.l.b16 %v239_v1  ;;  %497 = vmatpush.bf16.msra.mxu0 %v1257_v0  ;;  %v1373_v4 = vmov 65535   ;;  %1259 = vmatpush.bf16.msra.mxu2 %v1257_v0  ;;  %s1881_s28 = smov (!%p176_p10, %s1028_s28), 63  ;;  %v1255_v9 = vld [vmem:[%s1871_s1 + $0x28] sm:$0xff]  ;;  %v1258_v10 = vld [vmem:[%s1871_s1 + $0x40] sm:$0xff]  ;;  %vm441_vm2 = vcmask 154624   ;;  %v1253_v15 = vld [vmem:[%s1871_s1 + $0x18] sm:$0xff] }
  0x15   : > { %v492_v5 = vsel %vm490_vm0, 4294967295, %v1373_v4  ;;  %s1217_s6 = sshll.u32 %s1881_s28, 3  ;;  %v1254_v14 = vld [vmem:[%s1871_s1 + $0x20] sm:$0xff]  ;;  %v1252_v16 = vld [vmem:[%s1871_s1 + $0x10] sm:$0xff]  ;;  %v1251_v17 = vld [vmem:[%s1871_s1 + $0x8] sm:$0xff]  ;;  %s1032_s5 = sshll.u32 %s1881_s28, 2 }
  0x16   : > { %v431_v6 = vpack.c.b16 %v421_v2, %v421_v2  ;;  %v493_v7 = vsel %vm491_vm1, %v492_v5, 0  ;;  %s1465_s11 = scalar_lea.vmem %s1870_s0, %s1217_s6  ;;  %v1250_v21 = vld [vmem:[%s1871_s1] sm:$0xff]  ;;  %s1566_s8 = scalar_lea.vmem %s1872_s2, %s1032_s5  ;;  %vm707_vm3 = vcmask 519168   ;;  %vm740_vm4 = vcmask 523264  }
  0x17   : > { %v1218_v11 = vld [vmem:[%s1465_s11 + $0x4] sm:$0xf]  ;;  %v1037_v12 = vld [vmem:[%s1465_s11 + $0x8] sm:$0xf0]  ;;  %v1220_v18 = vld [vmem:[%s1465_s11 + $0x14] sm:$0xf]  ;;  %p1327_p12 = pnand %p1326_p11, %p1432_p5  ;;  %p1332_p2 = por %p1331_p1, %p1330_p0 }
  0x18   : > { %v495_v8 = vand.u32 %v493_v7, %v431_v6  ;;  %498 = vmatpush.bf16.msra.mxu0 %v1256_v3  ;;  %1260 = vmatpush.bf16.msra.mxu2 %v1256_v3  ;;  %v1040_v13 = vor.u32 %v1218_v11, %v1037_v12  ;;  %v1045_v19 = vld [vmem:[%s1465_s11 + $0x18] sm:$0xf0]  ;;  %v1035_v22 = vld [vmem:[%s1465_s11] sm:$0xf]  ;;  %v1219_v23 = vld [vmem:[%s1465_s11 + $0x4] sm:$0xf0] }
  0x19   : > { %v1048_v20 = vor.u32 %v1220_v18, %v1045_v19  ;;  %v1099_v24 = vld [vmem:[%s1465_s11 + $0x80] sm:$0xf]  ;;  %v1235_v25 = vld [vmem:[%s1465_s11 + $0x84] sm:$0xf0]  ;;  %v1036_v26 = vor.u32 %v1219_v23, %v1035_v22  ;;  %v1236_v28 = vld [vmem:[%s1465_s11 + $0x94] sm:$0xf]  ;;  %p1328_p13 = pneg %p1327_p12 }
  0x1a   : > { %592 = vmatpush.bf16.msra.mxu1 %v495_v8  ;;  %1267 = vmatpush.bf16.msra.mxu3 %v495_v8  ;;  %v1100_v27 = vor.u32 %v1235_v25, %v1099_v24  ;;  %v1109_v29 = vld [vmem:[%s1465_s11 + $0x98] sm:$0xf0]  ;;  %v1222_v31 = vld [vmem:[%s1465_s11 + $0x24] sm:$0xf]  ;;  %v1053_v32 = vld [vmem:[%s1465_s11 + $0x28] sm:$0xf0] }
  0x1b   : > { %v1112_v30 = vor.u32 %v1236_v28, %v1109_v29  ;;  %v1056_v33 = vor.u32 %v1222_v31, %v1053_v32  ;;  %v1043_v34 = vld [vmem:[%s1465_s11 + $0x10] sm:$0xf]  ;;  %v1221_v35 = vld [vmem:[%s1465_s11 + $0x14] sm:$0xf0]  ;;  %v1238_v40 = vld [vmem:[%s1465_s11 + $0xa4] sm:$0xf]  ;;  %p1333_p3 = pnand %p1332_p2, %p1328_p13 }
  0x1c   : > { %499 = vmatpush.bf16.msra.mxu0 %v1255_v9  ;;  %1261 = vmatpush.bf16.msra.mxu2 %v1255_v9  ;;  %v1107_v36 = vld [vmem:[%s1465_s11 + $0x90] sm:$0xf]  ;;  %v1237_v37 = vld [vmem:[%s1465_s11 + $0x94] sm:$0xf0]  ;;  %v1044_v38 = vor.u32 %v1221_v35, %v1043_v34  ;;  %v1117_v41 = vld [vmem:[%s1465_s11 + $0xa8] sm:$0xf0] }
  0x1d   : > { %v1108_v39 = vor.u32 %v1237_v37, %v1107_v36  ;;  %v1120_v42 = vor.u32 %v1238_v40, %v1117_v41  ;;  %v1224_v43 = vld [vmem:[%s1465_s11 + $0x34] sm:$0xf]  ;;  %v1061_v44 = vld [vmem:[%s1465_s11 + $0x38] sm:$0xf0]  ;;  %v1051_v46 = vld [vmem:[%s1465_s11 + $0x20] sm:$0xf] }
  0x1e   : > { %593 = vmatpush.bf16.msra.mxu1 %v1258_v10  ;;  %1268 = vmatpush.bf16.msra.mxu3 %v1258_v10  ;;  %v1064_v45 = vor.u32 %v1224_v43, %v1061_v44  ;;  %v1223_v47 = vld [vmem:[%s1465_s11 + $0x24] sm:$0xf0]  ;;  %v1115_v48 = vld [vmem:[%s1465_s11 + $0xa0] sm:$0xf]  ;;  %v1240_v52 = vld [vmem:[%s1465_s11 + $0xb4] sm:$0xf] }
  0x1f   : > { %v1239_v49 = vld [vmem:[%s1465_s11 + $0xa4] sm:$0xf0]  ;;  %v1052_v50 = vor.u32 %v1223_v47, %v1051_v46  ;;  %v1125_v53 = vld [vmem:[%s1465_s11 + $0xb8] sm:$0xf0]  ;;  %v1226_v55 = vld [vmem:[%s1465_s11 + $0x44] sm:$0xf] }
  0x20   : > { %500 = vmatpush.bf16.msra.mxu0 %v1254_v14  ;;  %1262 = vmatpush.bf16.msra.mxu2 %v1254_v14  ;;  %v1116_v51 = vor.u32 %v1239_v49, %v1115_v48  ;;  %v1128_v54 = vor.u32 %v1240_v52, %v1125_v53  ;;  %v1069_v56 = vld [vmem:[%s1465_s11 + $0x48] sm:$0xf0]  ;;  %v1059_v58 = vld [vmem:[%s1465_s11 + $0x30] sm:$0xf]  ;;  %v1225_v59 = vld [vmem:[%s1465_s11 + $0x34] sm:$0xf0] }
  0x21   : > { %1197 = vmatmul.msk.bf16.vlgmr.msra.gmra.mxu1 %vm441_vm2, %v1040_v13  ;;  %1206 = vmatmul.msk.bf16.vlgmr.msra.gmra.mxu3 %vm441_vm2, %v1112_v30  ;;  %v1072_v57 = vor.u32 %v1226_v55, %v1069_v56  ;;  %v1123_v60 = vld [vmem:[%s1465_s11 + $0xb0] sm:$0xf]  ;;  %v1241_v61 = vld [vmem:[%s1465_s11 + $0xb4] sm:$0xf0]  ;;  %v1060_v62 = vor.u32 %v1225_v59, %v1059_v58  ;;  %v1242_v0 = vld [vmem:[%s1465_s11 + $0xc4] sm:$0xf] }
  0x22   : > { %v1124_v63 = vor.u32 %v1241_v61, %v1123_v60  ;;  %v1133_v1 = vld [vmem:[%s1465_s11 + $0xc8] sm:$0xf0]  ;;  %v1228_v3 = vld [vmem:[%s1465_s11 + $0x54] sm:$0xf]  ;;  %v1077_v4 = vld [vmem:[%s1465_s11 + $0x58] sm:$0xf0] }
  0x23   : > { %v1136_v2 = vor.u32 %v1242_v0, %v1133_v1  ;;  %v1080_v5 = vor.u32 %v1228_v3, %v1077_v4  ;;  %v1067_v6 = vld [vmem:[%s1465_s11 + $0x40] sm:$0xf]  ;;  %v1227_v7 = vld [vmem:[%s1465_s11 + $0x44] sm:$0xf0]  ;;  %v1244_v12 = vld [vmem:[%s1465_s11 + $0xd4] sm:$0xf] }
  0x24   : > { %501 = vmatpush.bf16.msra.mxu0 %v1253_v15  ;;  %1263 = vmatpush.bf16.msra.mxu2 %v1253_v15  ;;  %v1131_v8 = vld [vmem:[%s1465_s11 + $0xc0] sm:$0xf]  ;;  %v1243_v9 = vld [vmem:[%s1465_s11 + $0xc4] sm:$0xf0]  ;;  %v1068_v10 = vor.u32 %v1227_v7, %v1067_v6  ;;  %v1141_v13 = vld [vmem:[%s1465_s11 + $0xd8] sm:$0xf0] }
  0x25   : > { %v1132_v11 = vor.u32 %v1243_v9, %v1131_v8  ;;  %v1144_v14 = vor.u32 %v1244_v12, %v1141_v13  ;;  %v1230_v15 = vld [vmem:[%s1465_s11 + $0x64] sm:$0xf]  ;;  %v1075_v18 = vld [vmem:[%s1465_s11 + $0x50] sm:$0xf]  ;;  %v1229_v19 = vld [vmem:[%s1465_s11 + $0x54] sm:$0xf0] }
  0x26   : > { %v1076_v22 = vor.u32 %v1229_v19, %v1075_v18  ;;  %v1246_v24 = vld [vmem:[%s1465_s11 + $0xe4] sm:$0xf]  ;;  %v1149_v25 = vld [vmem:[%s1465_s11 + $0xe8] sm:$0xf0]  ;;  %v1093_v28 = vld [vmem:[%s1465_s11 + $0x78] sm:$0xf0] }
  0x27   : > { %v1083_v30 = vld [vmem:[%s1465_s11 + $0x60] sm:$0xf]  ;;  %v1231_v31 = vld [vmem:[%s1465_s11 + $0x64] sm:$0xf0]  ;;  %v1248_v36 = vld [vmem:[%s1465_s11 + $0xf4] sm:$0xf] }
  0x28   : > { %502 = vmatpush.bf16.msra.mxu0 %v1252_v16  ;;  %1264 = vmatpush.bf16.msra.mxu2 %v1252_v16  ;;  %v1085_v16 = vld [vmem:[%s1465_s11 + $0x68] sm:$0xf0]  ;;  %v1147_v32 = vld [vmem:[%s1465_s11 + $0xe0] sm:$0xf]  ;;  %v1084_v34 = vor.u32 %v1231_v31, %v1083_v30  ;;  %v1157_v37 = vld [vmem:[%s1465_s11 + $0xf8] sm:$0xf0] }
  0x29   : > { %v1101_v40 = vld [vmem:[%s1465_s11 + $0x88] sm:$0xf0]  ;;  %v1233_v43 = vld [vmem:[%s1465_s11 + $0x74] sm:$0xf0]  ;;  %s172_s28 = sand.u32 1, %s1363_s13   ;;  %vm912_vm5 = vcmask 517120  }
  0x2a   : > { %v1249_v46 = vld [vmem:[%s1465_s11 + $0xf4] sm:$0xf0]  ;;  %s1027_s9 = sshll.u32 %s172_s28, 1  ;;  %s920_s16 = scalar_lea.sflag [#allocation3], %s172_s28 }
  0x2b   : > { %s174_s20 = scalar_lea.vmem [#allocation2], %s1027_s9 }
  0x2c   : > { %503 = vmatpush.bf16.msra.mxu0 %v1251_v17  ;;  %1265 = vmatpush.bf16.msra.mxu2 %v1251_v17  ;;  %v1088_v17 = vor.u32 %v1230_v15, %v1085_v16  ;;  %s936_s24 = sshll.u32 %s174_s20, 4  ;;  %s937_s24 = int_to_ptr.vmem [resolvable:$true] %s936_s24 }
  0x30   : > { %504 = vmatpush.bf16.msra.mxu0 %v1250_v21  ;;  %1266 = vmatpush.bf16.msra.mxu2 %v1250_v21  ;;  %v1245_v21 = vld [vmem:[%s1465_s11 + $0xd4] sm:$0xf0] }
  0x31   : > { %1198 = vmatmul.msk.bf16.gmra.mxu1 %vm441_vm2, %v1048_v20  ;;  %1207 = vmatmul.msk.bf16.gmra.mxu3 %vm441_vm2, %v1120_v42  ;;  %v1139_v20 = vld [vmem:[%s1465_s11 + $0xd0] sm:$0xf] }
  0x32   : > { %v1140_v23 = vor.u32 %v1245_v21, %v1139_v20  ;;  %v1091_v42 = vld [vmem:[%s1465_s11 + $0x70] sm:$0xf] }
  0x33   : > { %505 = vmatmul.bf16.vlgmr.msra.gmra.mxu0 %v1036_v26  ;;  %545 = vmatmul.bf16.vlgmr.msra.gmra.mxu2 %v1100_v27  ;;  %v1152_v26 = vor.u32 %v1246_v24, %v1149_v25  ;;  %v1232_v27 = vld [vmem:[%s1465_s11 + $0x74] sm:$0xf]  ;;  %v1092_v47 = vor.u32 %v1233_v43, %v1091_v42 }
  0x34   : > { %v1096_v29 = vor.u32 %v1232_v27, %v1093_v28 }
  0x41   : > { %1199 = vmatmul.msk.bf16.gmra.mxu1 %vm441_vm2, %v1056_v33  ;;  %1208 = vmatmul.msk.bf16.gmra.mxu3 %vm441_vm2, %v1128_v54  ;;  %v1247_v33 = vld [vmem:[%s1465_s11 + $0xe4] sm:$0xf0] }
  0x42   : > { %v1148_v35 = vor.u32 %v1247_v33, %v1147_v32 }
  0x43   : > { %510 = vmatmul.bf16.gmra.mxu0 %v1044_v38  ;;  %550 = vmatmul.bf16.gmra.mxu2 %v1108_v39  ;;  %v1160_v38 = vor.u32 %v1248_v36, %v1157_v37  ;;  %v1234_v39 = vld [vmem:[%s1465_s11 + $0x84] sm:$0xf] }
  0x44   : > { %v1104_v41 = vor.u32 %v1234_v39, %v1101_v40 }
  0x51   : > { %1200 = vmatmul.msk.bf16.gmra.mxu1 %vm441_vm2, %v1064_v45  ;;  %1209 = vmatmul.msk.bf16.gmra.mxu3 %vm441_vm2, %v1136_v2  ;;  %v1155_v45 = vld [vmem:[%s1465_s11 + $0xf0] sm:$0xf] }
  0x52   : > { %v1156_v48 = vor.u32 %v1249_v46, %v1155_v45 }
  0x53   : > { %515 = vmatmul.bf16.gmra.mxu0 %v1052_v50  ;;  %555 = vmatmul.bf16.gmra.mxu2 %v1116_v51 }
  0x61   : > { %1201 = vmatmul.msk.bf16.gmra.mxu1 %vm441_vm2, %v1072_v57  ;;  %1210 = vmatmul.msk.bf16.gmra.mxu3 %vm441_vm2, %v1144_v14 }
  0x63   : > { %520 = vmatmul.bf16.gmra.mxu0 %v1060_v62  ;;  %560 = vmatmul.bf16.gmra.mxu2 %v1124_v63 }
  0x71   : > { %1202 = vmatmul.msk.bf16.gmra.mxu1 %vm441_vm2, %v1080_v5  ;;  %1211 = vmatmul.msk.bf16.gmra.mxu3 %vm441_vm2, %v1152_v26 }
  0x73   : > { %525 = vmatmul.bf16.gmra.mxu0 %v1068_v10  ;;  %565 = vmatmul.bf16.gmra.mxu2 %v1132_v11 }
  0x81   : > { %1203 = vmatmul.msk.bf16.gmra.mxu1 %vm441_vm2, %v1088_v17  ;;  %1212 = vmatmul.msk.bf16.gmra.mxu3 %vm441_vm2, %v1160_v38 }
  0x83   : > { %530 = vmatmul.bf16.gmra.mxu0 %v1076_v22  ;;  %570 = vmatmul.bf16.gmra.mxu2 %v1140_v23 }
  0x91   : > { %1204 = vmatmul.msk.bf16.gmra.mxu1 %vm441_vm2, %v1096_v29 }
  0x93   : > { %535 = vmatmul.bf16.gmra.mxu0 %v1084_v34  ;;  %575 = vmatmul.bf16.gmra.mxu2 %v1148_v35 }
  0x9e   : > { %v595_v44 = vpop.f32.mrf.mxu1 }
  0xa1   : > { %1205 = vmatmul.msk.bf16.gmra.mxu1 %vm441_vm2, %v1104_v41 }
  0xa3   : > { %540 = vmatmul.bf16.gmra.mxu0 %v1092_v47  ;;  %580 = vmatmul.bf16.gmra.mxu2 %v1156_v48 }
  0xa4   : > { %v640_v59 = vpop.f32.mrf.mxu3 }
  0xa6   : > { %v597_v49 = vpop.f32.mrf.mxu1 }
  0xac   : > { %v642_v8 = vpop.f32.mrf.mxu3 }
  0xae   : > { %v600_v50 = vpop.f32.mrf.mxu1 }
  0xb0   : > { %v506_v51 = vpop.f32.mrf.mxu0 }
  0xb1   : > { %v596_v52 = vadd.f32 %v595_v44, %v506_v51 }
  0xb3   : > { %v675_v53 = vpack.c.bf16 %v596_v52, %v596_v52  ;;  %v810_v57 = vmul.f32 %v596_v52, %v596_v52  ;;  %v741_v60 = vsel %vm740_vm4, %v596_v52, 0.0 }
  0xb4   : > { %v645_v20 = vpop.f32.mrf.mxu3 }
  0xb5   : > { %708 = vst.msk [vmem:[%s1566_s8] sm:$0xf] %vm707_vm3, %v675_v53  ;;  %v842_v1 = vsel %vm740_vm4, %v810_v57, 0.0 }
  0xb6   : > { %v602_v54 = vpop.f32.mrf.mxu1  ;;  %v1570_v55 = vpop.f32.mrf.mxu2 }
  0xb8   : > { %v508_v56 = vpop.f32.mrf.mxu0 }
  0xb9   : > { %v598_v58 = vadd.f32 %v597_v49, %v508_v56 }
  0xbb   : > { %v676_v61 = vpack.c.bf16 %v598_v58, %v598_v58  ;;  %v742_v62 = vsel %vm740_vm4, %v598_v58, 0.0  ;;  %v811_v63 = vmul.f32 %v598_v58, %v598_v58 }
  0xbc   : > { %v743_v0 = vadd.f32 %v742_v62, %v741_v60  ;;  %v647_v33 = vpop.f32.mrf.mxu3 }
  0xbd   : > { %709 = vst.msk [vmem:[%s1566_s8 + $0x4] sm:$0xf] %vm707_vm3, %v676_v61  ;;  %v843_v2 = vsel %vm740_vm4, %v811_v63, 0.0 }
  0xbe   : > { %v605_v3 = vpop.f32.mrf.mxu1  ;;  %v844_v4 = vadd.f32 %v843_v2, %v842_v1  ;;  %v1578_v5 = vpop.f32.mrf.mxu2 }
  0xc0   : > { %v511_v6 = vpop.f32.mrf.mxu0 }
  0xc1   : > { %v601_v7 = vadd.f32 %v600_v50, %v511_v6 }
  0xc3   : > { %v677_v9 = vpack.c.bf16 %v601_v7, %v601_v7  ;;  %v744_v10 = vsel %vm740_vm4, %v601_v7, 0.0  ;;  %v812_v11 = vmul.f32 %v601_v7, %v601_v7 }
  0xc4   : > { %v745_v12 = vadd.f32 %v744_v10, %v743_v0  ;;  %v650_v46 = vpop.f32.mrf.mxu3 }
  0xc5   : > { %710 = vst.msk [vmem:[%s1566_s8 + $0x8] sm:$0xf] %vm707_vm3, %v677_v9  ;;  %v845_v13 = vsel %vm740_vm4, %v812_v11, 0.0 }
  0xc6   : > { %v607_v14 = vpop.f32.mrf.mxu1  ;;  %v846_v15 = vadd.f32 %v845_v13, %v844_v4  ;;  %v551_v16 = vpop.f32.mrf.mxu2 }
  0xc7   : > { %v1584_v18 = vadd.f32 %v640_v59, %v551_v16 }
  0xc8   : > { %v513_v17 = vpop.f32.mrf.mxu0 }
  0xc9   : > { %v603_v19 = vadd.f32 %v602_v54, %v513_v17  ;;  %v693_v21 = vpack.c.bf16 %v1584_v18, %v1584_v18 }
  0xcb   : > { %v678_v22 = vpack.c.bf16 %v603_v19, %v603_v19  ;;  %v746_v23 = vsel %vm740_vm4, %v603_v19, 0.0  ;;  %v813_v24 = vmul.f32 %v603_v19, %v603_v19  ;;  %726 = vst.msk [vmem:[%s1566_s8 + $0x48] sm:$0xf] %vm707_vm3, %v693_v21 }
  0xcc   : > { %v747_v25 = vadd.f32 %v746_v23, %v745_v12  ;;  %v652_v54 = vpop.f32.mrf.mxu3 }
  0xcd   : > { %711 = vst.msk [vmem:[%s1566_s8 + $0xc] sm:$0xf] %vm707_vm3, %v678_v22  ;;  %v847_v26 = vsel %vm740_vm4, %v813_v24, 0.0 }
  0xce   : > { %v610_v27 = vpop.f32.mrf.mxu1  ;;  %v848_v28 = vadd.f32 %v847_v26, %v846_v15  ;;  %v553_v29 = vpop.f32.mrf.mxu2 }
  0xcf   : > { %v1594_v31 = vadd.f32 %v642_v8, %v553_v29 }
  0xd0   : > { %v516_v30 = vpop.f32.mrf.mxu0 }
  0xd1   : > { %v606_v32 = vadd.f32 %v605_v3, %v516_v30  ;;  %v694_v34 = vpack.c.bf16 %v1594_v31, %v1594_v31 }
  0xd3   : > { %v679_v35 = vpack.c.bf16 %v606_v32, %v606_v32  ;;  %v748_v36 = vsel %vm740_vm4, %v606_v32, 0.0  ;;  %v814_v37 = vmul.f32 %v606_v32, %v606_v32  ;;  %727 = vst.msk [vmem:[%s1566_s8 + $0x4c] sm:$0xf] %vm707_vm3, %v694_v34 }
  0xd4   : > { %v1599_v38 = vadd.f32 %v748_v36, %v747_v25  ;;  %v655_v63 = vpop.f32.mrf.mxu3 }
  0xd5   : > { %712 = vst.msk [vmem:[%s1566_s8 + $0x10] sm:$0xf] %vm707_vm3, %v679_v35  ;;  %v849_v39 = vsel %vm740_vm4, %v814_v37, 0.0 }
  0xd6   : > { %v612_v40 = vpop.f32.mrf.mxu1  ;;  %v1606_v41 = vadd.f32 %v849_v39, %v848_v28  ;;  %v556_v42 = vpop.f32.mrf.mxu2 }
  0xd7   : > { %v1608_v44 = vadd.f32 %v645_v20, %v556_v42 }
  0xd8   : > { %v518_v43 = vpop.f32.mrf.mxu0 }
  0xd9   : > { %v1610_v45 = vadd.f32 %v607_v14, %v518_v43  ;;  %v695_v47 = vpack.c.bf16 %v1608_v44, %v1608_v44 }
  0xdb   : > { %v680_v48 = vpack.c.bf16 %v1610_v45, %v1610_v45  ;;  %728 = vst.msk [vmem:[%s1566_s8 + $0x50] sm:$0xf] %vm707_vm3, %v695_v47  ;;  %v815_v47 = vmul.f32 %v1610_v45, %v1610_v45 }
  0xdc   : > { %v657_v8 = vpop.f32.mrf.mxu3 }
  0xdd   : > { %713 = vst.msk [vmem:[%s1566_s8 + $0x14] sm:$0xf] %vm707_vm3, %v680_v48 }
  0xde   : > { %v615_v49 = vpop.f32.mrf.mxu1  ;;  %v558_v50 = vpop.f32.mrf.mxu2 }
  0xdf   : > { %v1620_v52 = vadd.f32 %v647_v33, %v558_v50 }
  0xe0   : > { %v521_v51 = vpop.f32.mrf.mxu0 }
  0xe1   : > { %v1622_v53 = vadd.f32 %v610_v27, %v521_v51  ;;  %v696_v56 = vpack.c.bf16 %v1620_v52, %v1620_v52 }
  0xe3   : > { %v681_v57 = vpack.c.bf16 %v1622_v53, %v1622_v53  ;;  %729 = vst.msk [vmem:[%s1566_s8 + $0x54] sm:$0xf] %vm707_vm3, %v696_v56  ;;  %v816_v50 = vmul.f32 %v1622_v53, %v1622_v53  ;;  %v752_v56 = vsel %vm740_vm4, %v1622_v53, 0.0 }
  0xe4   : > { %v660_v19 = vpop.f32.mrf.mxu3 }
  0xe5   : > { %714 = vst.msk [vmem:[%s1566_s8 + $0x18] sm:$0xf] %vm707_vm3, %v681_v57 }
  0xe6   : > { %v617_v58 = vpop.f32.mrf.mxu1  ;;  %v561_v59 = vpop.f32.mrf.mxu2 }
  0xe7   : > { %v1632_v61 = vadd.f32 %v650_v46, %v561_v59 }
  0xe8   : > { %v523_v60 = vpop.f32.mrf.mxu0 }
  0xe9   : > { %v1634_v62 = vadd.f32 %v612_v40, %v523_v60  ;;  %v697_v0 = vpack.c.bf16 %v1632_v61, %v1632_v61 }
  0xeb   : > { %v682_v1 = vpack.c.bf16 %v1634_v62, %v1634_v62  ;;  %730 = vst.msk [vmem:[%s1566_s8 + $0x58] sm:$0xf] %vm707_vm3, %v697_v0  ;;  %v817_v57 = vmul.f32 %v1634_v62, %v1634_v62  ;;  %v754_v0 = vsel %vm740_vm4, %v1634_v62, 0.0 }
  0xec   : > { %v662_v28 = vpop.f32.mrf.mxu3 }
  0xed   : > { %715 = vst.msk [vmem:[%s1566_s8 + $0x1c] sm:$0xf] %vm707_vm3, %v682_v1 }
  0xee   : > { %v620_v2 = vpop.f32.mrf.mxu1  ;;  %v563_v3 = vpop.f32.mrf.mxu2 }
  0xef   : > { %v1644_v6 = vadd.f32 %v652_v54, %v563_v3  ;;  %v851_v54 = vsel %vm740_vm4, %v815_v47, 0.0 }
  0xf0   : > { %v526_v4 = vpop.f32.mrf.mxu0  ;;  %v852_v3 = vadd.f32 %v851_v54, %v1606_v41 }
  0xf1   : > { %v1646_v7 = vadd.f32 %v615_v49, %v526_v4  ;;  %v698_v9 = vpack.c.bf16 %v1644_v6, %v1644_v6  ;;  %v750_v49 = vsel %vm740_vm4, %v1610_v45, 0.0 }
  0xf2   : > { %v751_v59 = vadd.f32 %v750_v49, %v1599_v38 }
  0xf3   : > { %v683_v10 = vpack.c.bf16 %v1646_v7, %v1646_v7  ;;  %731 = vst.msk [vmem:[%s1566_s8 + $0x5c] sm:$0xf] %vm707_vm3, %v698_v9  ;;  %v818_v1 = vmul.f32 %v1646_v7, %v1646_v7  ;;  %v756_v9 = vsel %vm740_vm4, %v1646_v7, 0.0 }
  0xf4   : > { %v665_v39 = vpop.f32.mrf.mxu3  ;;  %v753_v4 = vadd.f32 %v752_v56, %v751_v59 }
  0xf5   : > { %716 = vst.msk [vmem:[%s1566_s8 + $0x20] sm:$0xf] %vm707_vm3, %v683_v10 }
  0xf6   : > { %v622_v11 = vpop.f32.mrf.mxu1  ;;  %v566_v12 = vpop.f32.mrf.mxu2 }
  0xf7   : > { %v1656_v14 = vadd.f32 %v655_v63, %v566_v12  ;;  %v853_v63 = vsel %vm740_vm4, %v816_v50, 0.0  ;;  %v755_v12 = vadd.f32 %v754_v0, %v753_v4 }
  0xf8   : > { %v528_v13 = vpop.f32.mrf.mxu0  ;;  %v854_v62 = vadd.f32 %v853_v63, %v852_v3 }
  0xf9   : > { %v618_v15 = vadd.f32 %v617_v58, %v528_v13  ;;  %v699_v16 = vpack.c.bf16 %v1656_v14, %v1656_v14  ;;  %v857_v13 = vsel %vm740_vm4, %v818_v1, 0.0 }
  0xfb   : > { %v684_v17 = vpack.c.bf16 %v618_v15, %v618_v15  ;;  %732 = vst.msk [vmem:[%s1566_s8 + $0x60] sm:$0xf] %vm707_vm3, %v699_v16  ;;  %v819_v10 = vmul.f32 %v618_v15, %v618_v15  ;;  %v758_v16 = vsel %vm740_vm4, %v618_v15, 0.0 }
  0xfd   : > { %717 = vst.msk [vmem:[%s1566_s8 + $0x24] sm:$0xf] %vm707_vm3, %v684_v17  ;;  %v859_v7 = vsel %vm740_vm4, %v819_v10, 0.0 }
  0xfe   : > { %v625_v20 = vpop.f32.mrf.mxu1  ;;  %v568_v21 = vpop.f32.mrf.mxu2 }
  0xff   : > { %v1664_v23 = vadd.f32 %v657_v8, %v568_v21  ;;  %v855_v8 = vsel %vm740_vm4, %v817_v57, 0.0 }
 0x100   : > { %v531_v22 = vpop.f32.mrf.mxu0 }
 0x101   : > { %v621_v24 = vadd.f32 %v620_v2, %v531_v22  ;;  %v700_v25 = vpack.c.bf16 %v1664_v23, %v1664_v23  ;;  %v667_v2 = vpop.f32.mrf.mxu3 }
 0x103   : > { %v685_v26 = vpack.c.bf16 %v621_v24, %v621_v24  ;;  %733 = vst.msk [vmem:[%s1566_s8 + $0x64] sm:$0xf] %vm707_vm3, %v700_v25  ;;  %v820_v41 = vmul.f32 %v621_v24, %v621_v24  ;;  %v760_v22 = vsel %vm740_vm4, %v621_v24, 0.0 }
 0x105   : > { %718 = vst.msk [vmem:[%s1566_s8 + $0x28] sm:$0xf] %vm707_vm3, %v685_v26 }
 0x106   : > { %v627_v27 = vpop.f32.mrf.mxu1  ;;  %v571_v29 = vpop.f32.mrf.mxu2 }
 0x107   : > { %v1672_v32 = vadd.f32 %v660_v19, %v571_v29  ;;  %v856_v19 = vadd.f32 %v855_v8, %v854_v62 }
 0x108   : > { %v533_v30 = vpop.f32.mrf.mxu0 }
 0x109   : > { %v623_v33 = vadd.f32 %v622_v11, %v533_v30  ;;  %v701_v34 = vpack.c.bf16 %v1672_v32, %v1672_v32  ;;  %v670_v50 = vpop.f32.mrf.mxu3 }
 0x10b   : > { %v686_v35 = vpack.c.bf16 %v623_v33, %v623_v33  ;;  %734 = vst.msk [vmem:[%s1566_s8 + $0x68] sm:$0xf] %vm707_vm3, %v701_v34  ;;  %v821_v25 = vmul.f32 %v623_v33, %v623_v33  ;;  %v861_v34 = vsel %vm740_vm4, %v820_v41, 0.0 }
 0x10d   : > { %719 = vst.msk [vmem:[%s1566_s8 + $0x2c] sm:$0xf] %vm707_vm3, %v686_v35  ;;  %v762_v35 = vsel %vm740_vm4, %v623_v33, 0.0 }
 0x10e   : > { %v630_v36 = vpop.f32.mrf.mxu1  ;;  %v573_v37 = vpop.f32.mrf.mxu2 }
 0x10f   : > { %v1680_v42 = vadd.f32 %v662_v28, %v573_v37 }
 0x110   : > { %v536_v40 = vpop.f32.mrf.mxu0 }
 0x111   : > { %v626_v43 = vadd.f32 %v625_v20, %v536_v40  ;;  %v702_v46 = vpack.c.bf16 %v1680_v42, %v1680_v42  ;;  %v757_v20 = vadd.f32 %v756_v9, %v755_v12 }
 0x113   : > { %v687_v48 = vpack.c.bf16 %v626_v43, %v626_v43  ;;  %735 = vst.msk [vmem:[%s1566_s8 + $0x6c] sm:$0xf] %vm707_vm3, %v702_v46  ;;  %v759_v28 = vadd.f32 %v758_v16, %v757_v20  ;;  %v822_v37 = vmul.f32 %v626_v43, %v626_v43  ;;  %v863_v46 = vsel %vm740_vm4, %v821_v25, 0.0 }
 0x114   : > { %v764_v47 = vsel %vm740_vm4, %v626_v43, 0.0 }
 0x115   : > { %720 = vst.msk [vmem:[%s1566_s8 + $0x30] sm:$0xf] %vm707_vm3, %v687_v48  ;;  %v761_v40 = vadd.f32 %v760_v22, %v759_v28  ;;  %v865_v33 = vsel %vm740_vm4, %v822_v37, 0.0  ;;  %v829_v37 = vmul.f32 %v1594_v31, %v1594_v31 }
 0x116   : > { %v1694_v51 = vpop.f32.mrf.mxu1  ;;  %v576_v58 = vpop.f32.mrf.mxu2 }
 0x117   : > { %v1702_v45 = vadd.f32 %v665_v39, %v576_v58  ;;  %v763_v56 = vadd.f32 %v762_v35, %v761_v40  ;;  %v776_v35 = vsel %vm740_vm4, %v1584_v18, 0.0 }
 0x118   : > { %v538_v60 = vpop.f32.mrf.mxu0 }
 0x119   : > { %v628_v53 = vadd.f32 %v627_v27, %v538_v60  ;;  %v703_v38 = vpack.c.bf16 %v1702_v45, %v1702_v45  ;;  %v858_v27 = vadd.f32 %v857_v13, %v856_v19  ;;  %v765_v60 = vadd.f32 %v764_v47, %v763_v56 }
 0x11a   : > { %v778_v47 = vsel %vm740_vm4, %v1594_v31, 0.0  ;;  %v831_v56 = vmul.f32 %v1620_v52, %v1620_v52  ;;  %v782_v31 = vsel %vm740_vm4, %v1620_v52, 0.0  ;;  %v786_v52 = vsel %vm740_vm4, %v1644_v6, 0.0 }
 0x11b   : > { %v688_v11 = vpack.c.bf16 %v628_v53, %v628_v53  ;;  %736 = vst.msk [vmem:[%s1566_s8 + $0x70] sm:$0xf] %vm707_vm3, %v703_v38  ;;  %v860_v39 = vadd.f32 %v859_v7, %v858_v27  ;;  %v823_v48 = vmul.f32 %v628_v53, %v628_v53  ;;  %v672_v7 = vpop.f32.mrf.mxu3 }
 0x11d   : > { %721 = vst.msk [vmem:[%s1566_s8 + $0x34] sm:$0xf] %vm707_vm3, %v688_v11  ;;  %v862_v54 = vadd.f32 %v861_v34, %v860_v39  ;;  %v867_v63 = vsel %vm740_vm4, %v823_v48, 0.0  ;;  %v830_v48 = vmul.f32 %v1608_v44, %v1608_v44 }
 0x11e   : > { %v635_v17 = vpop.f32.mrf.mxu1  ;;  %v578_v26 = vpop.f32.mrf.mxu2 }
 0x11f   : > { %v636_v21 = vadd.f32 %v635_v17, %v1570_v55  ;;  %v1724_v15 = vadd.f32 %v667_v2, %v578_v26  ;;  %v864_v59 = vadd.f32 %v863_v46, %v862_v54  ;;  %v828_v26 = vmul.f32 %v1584_v18, %v1584_v18 }
 0x120   : > { %v541_v30 = vpop.f32.mrf.mxu0  ;;  %v780_v54 = vsel %vm740_vm4, %v1608_v44, 0.0  ;;  %v784_v44 = vsel %vm740_vm4, %v1632_v61, 0.0 }
 0x121   : > { %v691_v29 = vpack.c.bf16 %v636_v21, %v636_v21  ;;  %v631_v55 = vadd.f32 %v630_v36, %v541_v30  ;;  %v704_v24 = vpack.c.bf16 %v1724_v15, %v1724_v15  ;;  %v766_v36 = vsel %vm740_vm4, %v628_v53, 0.0 }
 0x122   : > { %v866_v2 = vadd.f32 %v865_v33, %v864_v59  ;;  %v767_v3 = vadd.f32 %v766_v36, %v765_v60  ;;  %v826_v62 = vmul.f32 %v636_v21, %v636_v21  ;;  %v772_v19 = vsel %vm740_vm4, %v636_v21, 0.0 }
 0x123   : > { %724 = vst.msk [vmem:[%s1566_s8 + $0x40] sm:$0xf] %vm707_vm3, %v691_v29  ;;  %v689_v49 = vpack.c.bf16 %v631_v55, %v631_v55  ;;  %v824_v57 = vmul.f32 %v631_v55, %v631_v55  ;;  %v768_v0 = vsel %vm740_vm4, %v631_v55, 0.0  ;;  %v877_v46 = vsel %vm740_vm4, %v828_v26, 0.0 }
 0x124   : > { %737 = vst.msk [vmem:[%s1566_s8 + $0x74] sm:$0xf] %vm707_vm3, %v704_v24  ;;  %v868_v10 = vadd.f32 %v867_v63, %v866_v2  ;;  %v769_v11 = vadd.f32 %v768_v0, %v767_v3  ;;  %v873_v27 = vsel %vm740_vm4, %v826_v62, 0.0  ;;  %v833_v63 = vmul.f32 %v1644_v6, %v1644_v6 }
 0x125   : > { %722 = vst.msk [vmem:[%s1566_s8 + $0x38] sm:$0xf] %vm707_vm3, %v689_v49  ;;  %v869_v8 = vsel %vm740_vm4, %v824_v57, 0.0  ;;  %v881_v57 = vsel %vm740_vm4, %v830_v48, 0.0  ;;  %v834_v3 = vmul.f32 %v1656_v14, %v1656_v14  ;;  %v790_v6 = vsel %vm740_vm4, %v1664_v23, 0.0 }
 0x126   : > { %v637_v58 = vpop.f32.mrf.mxu1  ;;  %v581_v1 = vpop.f32.mrf.mxu2  ;;  %v870_v41 = vadd.f32 %v869_v8, %v868_v10  ;;  %v887_v8 = vsel %vm740_vm4, %v833_v63, 0.0  ;;  %v836_v62 = vmul.f32 %v1672_v32, %v1672_v32  ;;  %v839_v26 = vmul.f32 %v1724_v15, %v1724_v15 }
 0x127   : > { %v638_v43 = vadd.f32 %v637_v58, %v1578_v5  ;;  %v1743_v53 = vadd.f32 %v670_v50, %v581_v1  ;;  %v879_v50 = vsel %vm740_vm4, %v829_v37, 0.0  ;;  %v832_v58 = vmul.f32 %v1632_v61, %v1632_v61 }
 0x128   : > { %v543_v38 = vpop.f32.mrf.mxu0  ;;  %v788_v61 = vsel %vm740_vm4, %v1656_v14, 0.0  ;;  %v792_v14 = vsel %vm740_vm4, %v1672_v32, 0.0  ;;  %v796_v32 = vsel %vm740_vm4, %v1702_v45, 0.0  ;;  %v899_v37 = vsel %vm740_vm4, %v839_v26, 0.0 }
 0x129   : > { %v692_v4 = vpack.c.bf16 %v638_v43, %v638_v43  ;;  %v633_v9 = vadd.f32 %v1694_v51, %v543_v38  ;;  %v705_v5 = vpack.c.bf16 %v1743_v53, %v1743_v53  ;;  %v827_v20 = vmul.f32 %v638_v43, %v638_v43 }
 0x12a   : > { %v774_v28 = vsel %vm740_vm4, %v638_v43, 0.0  ;;  %v883_v43 = vsel %vm740_vm4, %v831_v56, 0.0  ;;  %v885_v2 = vsel %vm740_vm4, %v832_v58, 0.0 }
 0x12b   : > { %725 = vst.msk [vmem:[%s1566_s8 + $0x44] sm:$0xf] %vm707_vm3, %v692_v4  ;;  %v690_v12 = vpack.c.bf16 %v633_v9, %v633_v9  ;;  %v770_v13 = vsel %vm740_vm4, %v633_v9, 0.0  ;;  %v825_v16 = vmul.f32 %v633_v9, %v633_v9  ;;  %v875_v55 = vsel %vm740_vm4, %v827_v20, 0.0 }
 0x12c   : > { %v771_v17 = vadd.f32 %v770_v13, %v769_v11  ;;  %738 = vst.msk [vmem:[%s1566_s8 + $0x78] sm:$0xf] %vm707_vm3, %v705_v5  ;;  %v835_v9 = vmul.f32 %v1664_v23, %v1664_v23  ;;  %v889_v5 = vsel %vm740_vm4, %v834_v3, 0.0  ;;  %v893_v20 = vsel %vm740_vm4, %v836_v62, 0.0 }
 0x12d   : > { %723 = vst.msk [vmem:[%s1566_s8 + $0x3c] sm:$0xf] %vm707_vm3, %v690_v12  ;;  %v871_v51 = vsel %vm740_vm4, %v825_v16, 0.0  ;;  %v794_v23 = vsel %vm740_vm4, %v1680_v42, 0.0 }
 0x12e   : > { %v773_v22 = vadd.f32 %v772_v19, %v771_v17  ;;  %v872_v25 = vadd.f32 %v871_v51, %v870_v41  ;;  %v583_v29 = vpop.f32.mrf.mxu2  ;;  %v891_v16 = vsel %vm740_vm4, %v835_v9, 0.0  ;;  %v837_v41 = vmul.f32 %v1680_v42, %v1680_v42 }
 0x12f   : > { %v1762_v21 = vadd.f32 %v672_v7, %v583_v29  ;;  %v838_v51 = vmul.f32 %v1702_v45, %v1702_v45  ;;  %v798_v42 = vsel %vm740_vm4, %v1724_v15, 0.0  ;;  %v800_v45 = vsel %vm740_vm4, %v1743_v53, 0.0 }
 0x130   : > { %v775_v30 = vadd.f32 %v774_v28, %v773_v22  ;;  %v874_v34 = vadd.f32 %v873_v27, %v872_v25  ;;  %v895_v25 = vsel %vm740_vm4, %v837_v41, 0.0 }
 0x131   : > { %v706_v24 = vpack.c.bf16 %v1762_v21, %v1762_v21  ;;  %v897_v29 = vsel %vm740_vm4, %v838_v51, 0.0  ;;  %v802_v15 = vsel %vm740_vm4, %v1762_v21, 0.0 }
 0x132   : > { %v777_v39 = vadd.f32 %v776_v35, %v775_v30  ;;  %v876_v40 = vadd.f32 %v875_v55, %v874_v34  ;;  %v840_v30 = vmul.f32 %v1743_v53, %v1743_v53  ;;  %v841_v55 = vmul.f32 %v1762_v21, %v1762_v21 }
 0x133   : > { %739 = vst.msk [vmem:[%s1566_s8 + $0x7c] sm:$0xf] %vm707_vm3, %v706_v24 }
 0x134   : > { %v779_v49 = vadd.f32 %v778_v47, %v777_v39  ;;  %v878_v18 = vadd.f32 %v877_v46, %v876_v40  ;;  %v901_v24 = vsel %vm740_vm4, %v840_v30, 0.0  ;;  %v903_v48 = vsel %vm740_vm4, %v841_v55, 0.0 }
 0x136   : > { %v781_v33 = vadd.f32 %v780_v54, %v779_v49  ;;  %v880_v36 = vadd.f32 %v879_v50, %v878_v18 }
 0x138   : > { %v783_v59 = vadd.f32 %v782_v31, %v781_v33  ;;  %v882_v60 = vadd.f32 %v881_v57, %v880_v36 }
 0x13a   : > { %v884_v0 = vadd.f32 %v883_v43, %v882_v60  ;;  %v785_v1 = vadd.f32 %v784_v44, %v783_v59 }
 0x13c   : > { %v787_v4 = vadd.f32 %v786_v52, %v785_v1  ;;  %v886_v38 = vadd.f32 %v885_v2, %v884_v0 }
 0x13e   : > { %v789_v10 = vadd.f32 %v788_v61, %v787_v4  ;;  %v888_v11 = vadd.f32 %v887_v8, %v886_v38 }
 0x140   : > { %v791_v12 = vadd.f32 %v790_v6, %v789_v10  ;;  %v890_v13 = vadd.f32 %v889_v5, %v888_v11 }
 0x142   : > { %v793_v17 = vadd.f32 %v792_v14, %v791_v12  ;;  %v892_v19 = vadd.f32 %v891_v16, %v890_v13 }
 0x144   : > { %v795_v7 = vadd.f32 %v794_v23, %v793_v17  ;;  %v894_v22 = vadd.f32 %v893_v20, %v892_v19 }
 0x146   : > { %v797_v27 = vadd.f32 %v796_v32, %v795_v7  ;;  %v896_v28 = vadd.f32 %v895_v25, %v894_v22 }
 0x148   : > { %v898_v34 = vadd.f32 %v897_v29, %v896_v28  ;;  %v799_v35 = vadd.f32 %v798_v42, %v797_v27 }
 0x14a   : > { %v900_v39 = vadd.f32 %v899_v37, %v898_v34  ;;  %v801_v40 = vadd.f32 %v800_v45, %v799_v35 }
 0x14c   : > { %v902_v46 = vadd.f32 %v901_v24, %v900_v39  ;;  %v803_v47 = vadd.f32 %v802_v15, %v801_v40 }
 0x14e   : > { %v804_v49 = vrot.slane %v803_v47, 4  ;;  %v904_v18 = vadd.f32 %v903_v48, %v902_v46 }
 0x150   : > { %v805_v50 = vadd.f32 %v804_v49, %v803_v47  ;;  %v905_v53 = vrot.slane %v904_v18, 4 }
 0x152   : > { %v806_v54 = vrot.slane %v805_v50, 2  ;;  %v906_v56 = vadd.f32 %v905_v53, %v904_v18 }
 0x154   : > { %v807_v33 = vadd.f32 %v806_v54, %v805_v50  ;;  %v907_v36 = vrot.slane %v906_v56, 2 }
 0x156   : > { %v808_v21 = vrot.slane %v807_v33, 1  ;;  %v908_v57 = vadd.f32 %v907_v36, %v906_v56 }
 0x158   : > { %v909_v31 = vrot.slane %v908_v57, 1  ;;  %v809_v58 = vadd.f32 %v808_v21, %v807_v33 }
 0x15a   : > { %v910_v59 = vadd.f32 %v909_v31, %v908_v57 }
 0x15c   : > { %v911_v60 = vsel %vm490_vm0, %v809_v58, %v910_v59 }
 0x15d   : > { %913 = vst.msk [vmem:[%s174_s20] sm:$0x3] %vm912_vm5, %v911_v60 }
 0x15e   : > { %1336 = shalt.err (!%p1333_p3)
}
 0x15f   : > { %1269 = dma.vmem_to_hbm [thread:$0]  (%p1432_p5), %s937_s24, 32, %s939_s25, %s920_s16  }
 0x160 PF: > { %p1275_p4 = scmp.ge.s32.totalorder %s1371_s15, 2  ;;  %s958_s7 = sand.u32 1, %s1359_s12  }
 0x161   : > { %s959_s8 = scalar_lea.sflag [#allocation3], %s958_s7 }
 0x162   : > { %p1272_p7 = pnand %p1275_p4, %p1436_p6 }
 0x164   : > { %p1273_p8 = pneg %p1272_p7 }
 0x166   : > { %1354 = dma.done.wait (%p1273_p8), %s959_s8, 32  }
 0x167   : > { %1356 = vsyncadd (%p1273_p8), %s959_s8, 4294967264  ;;  %p14_p9 = scmp.ge.s32.totalorder %s1419_s18, 4   ;;  %s1876_s12 = smov %s1363_s13 }
 0x168   : > { %s1877_s13 = smov %s1367_s14  ;;  %s1878_s14 = smov %s1430_s21 }
 0x169   : > { %s1879_s15 = smov %s1419_s18  ;;  %16 = sbr.rel (!%p14_p9) target bundleno = 3 (0x3), region = 75 }
 0x16e   :  { %965 = vsyncpa [#allocation3], 1 }
 0x16f   :  { %967 = vsyncpa [#allocation3 + $0x1], 1 }

</bundles_post_ra>
